<compile_context>
chip_gen: v7x
topology: tpu7x:2x2x1
jax: 0.10.0
libtpu: 0.0.40
codegen_flags: <defaults>
</compile_context>

<pallas_src>
import numpy as np
import jax
import jax.numpy as jnp
from jax.experimental import pallas as pl
from jax.experimental.pallas import tpu as pltpu

# ----------------------------------------------------------------------------
# Synthetic tabular layout produced by the TabularEncoder (BayesianGMM style):
#   continuous column -> 1 tanh value + softmax over its cluster components
#   discrete column   -> softmax over its one-hot width
# (activation, width) blocks are static at trace time.
OUTPUT_LAYOUT = (("tanh", 1), ("softmax", 4), ("tanh", 1), ("softmax", 4), ("softmax", 5))
N_FEATURES = sum(w for _, w in OUTPUT_LAYOUT)          # encoder.n_features() == 15
N_SMAX_BLOCKS = sum(1 for a, _ in OUTPUT_LAYOUT if a == "softmax")

N_EMB = 16        # n_units_embedding
N_COND = 8        # n_units_conditional (from ConditionalDatasetSampler)
N_HID = 64        # decoder_n_units_hidden (kept small for the example)
NEG_SLOPE = 0.01  # nn.LeakyReLU default (decoder_nonlin='leaky_relu')

D0 = N_EMB + N_COND           # decoder input width (24)
D1 = N_HID + D0               # after residual concat of layer 1 (88)
D2 = N_HID + D1               # after residual concat of layer 2 (152)

DPAD = 128                    # lane width of every hidden / output operand
MAX_TILE_B = 1024             # batch rows per grid step for large counts (sweepable)

# Row layout of the packed VECS table.
_B1_ROW, _B2_ROW, _B3_ROW, _TANH_ROW, _SMAX_ROW = 0, 1, 2, 3, 4
_MEMBER_ROW0 = 5
_NEG_ROW0 = 5 + N_SMAX_BLOCKS
_N_VEC_ROWS = ((5 + 2 * N_SMAX_BLOCKS + 7) // 8) * 8   # padded to sublane multiple


def _leaky_relu(x):
    return jnp.where(x > 0, x, NEG_SLOPE * x)


# ----------------------------------------------------------------------------
# Kernel: one (tile_b, *) batch tile per grid step; packed weights stay resident.
def decoder_kernel(x_ref, wx_ref, wstack_ref, vec_ref, out_ref):
    x = x_ref[...]                                                    # (T, 24)

    # All three x-contractions (w1, w2_x, w3_x) fused into one K=24 matmul.
    xc = jnp.dot(x, wx_ref[...], preferred_element_type=jnp.float32)  # (T, 384)
    x_w1 = xc[:, 0:DPAD]
    x_w2 = xc[:, DPAD:2 * DPAD]
    x_w3 = xc[:, 2 * DPAD:3 * DPAD]

    b1 = vec_ref[_B1_ROW:_B1_ROW + 1, :]
    b2 = vec_ref[_B2_ROW:_B2_ROW + 1, :]
    b3 = vec_ref[_B3_ROW:_B3_ROW + 1, :]

    # Residual hidden layer 1 (padded lanes >= 64 stay exactly 0).
    h1 = _leaky_relu(x_w1 + b1)

    # Residual hidden layer 2: concat([h1, x]) @ w2 == h1 @ w2_h + x @ w2_x.
    h2 = _leaky_relu(
        jnp.dot(h1, wstack_ref[0], preferred_element_type=jnp.float32) + x_w2 + b2)

    # Output projection: [h2 | h1] packed into one 128-lane operand via an XLU
    # rotate (h1/h2 lanes 64..127 are zero), then a single 128x128 dot.
    h2h1 = h2 + pltpu.roll(h1, N_HID, 1)
    out = (jnp.dot(h2h1, wstack_ref[1], preferred_element_type=jnp.float32)
           + x_w3 + b3)                                               # (T, 128)

    # decoder_nonlin_out: masked full-width tanh / per-block stable softmax.
    tanh_mask = vec_ref[_TANH_ROW:_TANH_ROW + 1, :]                   # (1, 128)
    smax_mask = vec_ref[_SMAX_ROW:_SMAX_ROW + 1, :]                   # (1, 128)

    # Per-lane block max via precomputed additive (-1e30) masks (no cmp/select).
    blockmax = jnp.zeros_like(out)
    for b in range(N_SMAX_BLOCKS):
        member = vec_ref[_MEMBER_ROW0 + b:_MEMBER_ROW0 + b + 1, :]    # 0/1 lanes
        neg = vec_ref[_NEG_ROW0 + b:_NEG_ROW0 + b + 1, :]             # 0 / -1e30
        mb = jnp.max(out + neg, axis=-1, keepdims=True)               # (T, 1)
        blockmax = blockmax + member * mb

    # Stable exp restricted to softmax lanes; block sums via one MXU dot with
    # the block-membership matrix; exact EUP reciprocal for the normalization.
    e = jnp.exp((out - blockmax) * smax_mask) * smax_mask
    denom = jnp.dot(e, wstack_ref[2], preferred_element_type=jnp.float32)
    denom = denom + (1.0 - smax_mask)        # avoid 0 on tanh / padded lanes
    sm = e * pl.reciprocal(denom)            # approx=False: blocks sum to 1

    out_ref[...] = (tanh_mask * jnp.tanh(out) + sm).astype(out_ref.dtype)


# ----------------------------------------------------------------------------
# Wrapper-side parameter packing (numpy, staged through pallas_call).
def prepare_params(params):
    w1, b1, w2, b2, w3, b3 = (np.asarray(p, np.float32) for p in params)

    # x-contraction weights concatenated along the output axis -> one K=24 dot.
    wx = np.zeros((D0, 3 * DPAD), np.float32)
    wx[:, 0:N_HID] = w1                                    # layer 1: x @ w1
    wx[:, DPAD:DPAD + N_HID] = w2[N_HID:]                  # layer 2: x @ w2[x-rows]
    wx[:, 2 * DPAD:2 * DPAD + N_FEATURES] = w3[2 * N_HID:]  # output:  x @ w3[x-rows]

    # h-contraction weights + softmax block matrix, stacked (3, 128, 128).
    wstack = np.zeros((3, DPAD, DPAD), np.float32)
    wstack[0, :N_HID, :N_HID] = w2[:N_HID]                             # h1 @ w2_h
    wstack[1, :N_HID, :N_FEATURES] = w3[:N_HID]                        # h2 rows
    wstack[1, N_HID:2 * N_HID, :N_FEATURES] = w3[N_HID:2 * N_HID]      # h1 rows (rolled)

    # Epilogue masks / biases packed into one (rows, 128) table.
    tanh_mask = np.zeros((DPAD,), np.float32)
    smax_mask = np.zeros((DPAD,), np.float32)
    block_id = np.full((DPAD,), -1, np.int64)
    off, blk = 0, 0
    for act, width in OUTPUT_LAYOUT:
        if act == "tanh":
            tanh_mask[off:off + width] = 1.0
        else:
            smax_mask[off:off + width] = 1.0
            block_id[off:off + width] = blk
            blk += 1
        off += width
    assert blk == N_SMAX_BLOCKS

    bmat = ((block_id[:, None] == block_id[None, :]) & (block_id[:, None] >= 0))
    wstack[2] = bmat.astype(np.float32)

    vecs = np.zeros((_N_VEC_ROWS, DPAD), np.float32)
    vecs[_B1_ROW, :N_HID] = b1.reshape(-1)
    vecs[_B2_ROW, :N_HID] = b2.reshape(-1)
    vecs[_B3_ROW, :N_FEATURES] = b3.reshape(-1)
    vecs[_TANH_ROW] = tanh_mask
    vecs[_SMAX_ROW] = smax_mask
    for b in range(N_SMAX_BLOCKS):
        vecs[_MEMBER_ROW0 + b] = (block_id == b).astype(np.float32)
        vecs[_NEG_ROW0 + b] = np.where(block_id == b, 0.0, -1e30).astype(np.float32)

    return jnp.asarray(wx), jnp.asarray(wstack), jnp.asarray(vecs)


def _round_up(n, m):
    return ((n + m - 1) // m) * m


def _pick_tile_b(count, max_tile=MAX_TILE_B):
    # Small batches: one exact-size tile (no wasted epilogue / HBM writeback).
    if count <= 512:
        return _round_up(max(count, 1), 8)
    # Large batches: >= 2 grid steps so 'parallel' uses both v7x TensorCores,
    # capped at max_tile rows (512+ row tiles reach ~85% of HBM roofline).
    return min(max_tile, _round_up(pl.cdiv(count, 2), 8))


def vae_generate(z, cond, params, *, max_tile_b=MAX_TILE_B, out_dtype=jnp.float32):
    """Pallas-backed equivalent of TabularVAE.forward (decoder generation)."""
    wx, wstack, vecs = prepare_params(params)
    x = jnp.concatenate([z, cond], axis=-1).astype(jnp.float32)       # (N, 24)
    count = x.shape[0]

    tile_b = _pick_tile_b(count, max_tile_b)
    b_pad = pl.cdiv(count, tile_b) * tile_b
    if b_pad != count:
        x = jnp.zeros((b_pad, D0), jnp.float32).at[:count].set(x)
    grid = (b_pad // tile_b,)

    out_itemsize = int(np.dtype(out_dtype).itemsize)
    flops = int(2 * b_pad * (D0 * 3 * DPAD + 3 * DPAD * DPAD))
    transcendentals = int(b_pad * 3 * DPAD)
    bytes_accessed = int(4 * b_pad * D0 + out_itemsize * b_pad * DPAD
                         + 4 * (wx.size + wstack.size + vecs.size))

    # v5e scoped-VMEM default is 16 MiB; raise the limit only if the chosen
    # tile actually needs it (double-buffered x/out + resident weights).
    vmem_need = (2 * tile_b * D0 * 4 + 2 * tile_b * DPAD * out_itemsize
                 + 2 * 4 * int(wx.size + wstack.size + vecs.size) + (2 << 20))
    compiler_kwargs = {"dimension_semantics": ("parallel",)}
    if vmem_need > (16 << 20):
        compiler_kwargs["vmem_limit_bytes"] = int(vmem_need)

    out = pl.pallas_call(
        decoder_kernel,
        out_shape=jax.ShapeDtypeStruct((b_pad, DPAD), out_dtype),
        grid=grid,
        in_specs=[
            pl.BlockSpec((tile_b, D0), lambda i: (i, 0)),             # natural-width x
            pl.BlockSpec(wx.shape, lambda i: (0, 0)),                 # resident
            pl.BlockSpec(wstack.shape, lambda i: (0, 0, 0)),          # resident
            pl.BlockSpec(vecs.shape, lambda i: (0, 0)),               # resident
        ],
        out_specs=pl.BlockSpec((tile_b, DPAD), lambda i: (i, 0)),
        compiler_params=pltpu.CompilerParams(**compiler_kwargs),
        cost_estimate=pl.CostEstimate(flops=flops,
                                      transcendentals=transcendentals,
                                      bytes_accessed=bytes_accessed),
    )(x, wx, wstack, vecs)

    return out[:count, :N_FEATURES]


# ----------------------------------------------------------------------------
def init_params(key):
    """Deterministic torch.nn.Linear-style init: U(-1/sqrt(fan_in), 1/sqrt(fan_in))."""
    def linear(k, fan_in, fan_out):
        kw, kb = jax.random.split(k)
        bound = 1.0 / jnp.sqrt(fan_in)
        w = jax.random.uniform(kw, (fan_in, fan_out), jnp.float32, -bound, bound)
        b = jax.random.uniform(kb, (1, fan_out), jnp.float32, -bound, bound)
        return w, b

    k1, k2, k3 = jax.random.split(key, 3)
    w1, b1 = linear(k1, D0, N_HID)
    w2, b2 = linear(k2, D1, N_HID)
    w3, b3 = linear(k3, D2, N_FEATURES)
    return (w1, b1, w2, b2, w3, b3)


def reference_generate(z, cond, params):
    """Pure-JAX reference of the same forward pass (for correctness check)."""
    w1, b1, w2, b2, w3, b3 = params
    x = jnp.concatenate([z, cond], axis=-1)
    h1 = _leaky_relu(x @ w1 + b1)
    x1 = jnp.concatenate([h1, x], axis=-1)
    h2 = _leaky_relu(x1 @ w2 + b2)
    x2 = jnp.concatenate([h2, x1], axis=-1)
    out = x2 @ w3 + b3
    pieces, off = [], 0
    for act, width in OUTPUT_LAYOUT:
        seg = out[:, off:off + width]
        pieces.append(jnp.tanh(seg) if act == "tanh" else jax.nn.softmax(seg, axis=-1))
        off += width
    return jnp.concatenate(pieces, axis=-1)


# TODO(synk): TabularEncoder / OneHotEncoder fitting, ConditionalDatasetSampler,
# the FASD training loops and inverse_transform are host-side (pandas/sklearn)
# preprocessing with no Pallas equivalent; only the generative forward pass is
# implemented here. In-kernel z generation via pltpu.prng_seed/stateful_normal
# is a further option but was kept out so results match the JAX reference z.

if __name__ == "__main__":
    key = jax.random.PRNGKey(0)
    k_param, k_z, k_cond = jax.random.split(key, 3)

    params = init_params(k_param)

    count = 8  # number of samples to generate (batch)
    # z ~ N(0, I), as in VAE.generate
    z = jax.random.normal(k_z, (count, N_EMB), jnp.float32)
    # conditional: one-hot samples from the dataloader_sampler
    cond_idx = jax.random.randint(k_cond, (count,), 0, N_COND)
    cond = jax.nn.one_hot(cond_idx, N_COND, dtype=jnp.float32)

    out = jax.block_until_ready(vae_generate(z, cond, params))
    ref = reference_generate(z, cond, params)

    assert out.shape == (count, N_FEATURES)
    assert jnp.allclose(out, ref, atol=1e-2, rtol=1e-2), "Pallas kernel mismatch vs reference"

    # With the exact EUP reciprocal, per-block probabilities sum to 1.
    off = 0
    for act, width in OUTPUT_LAYOUT:
        if act == "softmax":
            s = jnp.sum(out[:, off:off + width], axis=-1)
            assert jnp.allclose(s, jnp.ones_like(s), atol=1e-4), "softmax not normalized"
        off += width

    # bf16 output variant (halves the HBM writeback of this write-dominated kernel).
    out_bf16 = jax.block_until_ready(
        vae_generate(z, cond, params, out_dtype=jnp.bfloat16))
    assert jnp.allclose(out_bf16.astype(jnp.float32), ref, atol=3e-2, rtol=3e-2), \
        "bf16-output kernel mismatch vs reference"

    print("KERNEL_OK")
</pallas_src>

<mosaic_0001>
module attributes {stable_mosaic.version = 11 : i64} {
  func.func @decoder_kernel(%arg0: i32, %arg1: memref<8x24xf32, #tpu.memory_space<vmem>>, %arg2: memref<24x384xf32, #tpu.memory_space<vmem>>, %arg3: memref<3x128x128xf32, #tpu.memory_space<vmem>>, %arg4: memref<16x128xf32, #tpu.memory_space<vmem>>, %arg5: memref<8x128xf32, #tpu.memory_space<vmem>>) attributes {dimension_semantics = [#tpu.dimension_semantics<parallel>], iteration_bounds = array<i64: 1>, scalar_prefetch = 0 : i64, scratch_operands = 0 : i64, tpu.core_type = #tpu.core_type<tc>, window_params = [{transform_indices = @transform_0, window_bounds = array<i64: 8, 24>}, {pipeline_mode = #tpu.pipeline_mode<synchronous>, transform_indices = @transform_1, window_bounds = array<i64: 24, 384>}, {pipeline_mode = #tpu.pipeline_mode<synchronous>, transform_indices = @transform_2, window_bounds = array<i64: 3, 128, 128>}, {pipeline_mode = #tpu.pipeline_mode<synchronous>, transform_indices = @transform_3, window_bounds = array<i64: 16, 128>}, {transform_indices = @transform_4, window_bounds = array<i64: 8, 128>}]} {
    %c0 = arith.constant 0 : index
    %c0_0 = arith.constant 0 : index
    %0 = vector.load %arg1[%c0, %c0_0] : memref<8x24xf32, #tpu.memory_space<vmem>>, vector<8x24xf32>
    %c0_1 = arith.constant 0 : index
    %c0_2 = arith.constant 0 : index
    %1 = vector.load %arg2[%c0_1, %c0_2] : memref<24x384xf32, #tpu.memory_space<vmem>>, vector<24x384xf32>
    %cst = arith.constant dense<0.000000e+00> : vector<8x384xf32>
    %2 = tpu.matmul %0, %1, %cst {dimension_numbers = #tpu.dot_dimension_numbers<[1], [0], [0], [1], [0, 0, 1, 1], [], []>} : vector<8x24xf32>, vector<24x384xf32>, vector<8x384xf32> -> vector<8x384xf32>
    %3 = vector.extract_strided_slice %2 {offsets = [0, 0], sizes = [8, 128], strides = [1, 1]} : vector<8x384xf32> to vector<8x128xf32>
    %4 = vector.extract_strided_slice %2 {offsets = [0, 128], sizes = [8, 128], strides = [1, 1]} : vector<8x384xf32> to vector<8x128xf32>
    %5 = vector.extract_strided_slice %2 {offsets = [0, 256], sizes = [8, 128], strides = [1, 1]} : vector<8x384xf32> to vector<8x128xf32>
    %c0_3 = arith.constant 0 : index
    %c0_4 = arith.constant 0 : index
    %6 = vector.load %arg4[%c0_3, %c0_4] : memref<16x128xf32, #tpu.memory_space<vmem>>, vector<1x128xf32>
    %c1 = arith.constant 1 : index
    %c0_5 = arith.constant 0 : index
    %7 = vector.load %arg4[%c1, %c0_5] : memref<16x128xf32, #tpu.memory_space<vmem>>, vector<1x128xf32>
    %c2 = arith.constant 2 : index
    %c0_6 = arith.constant 0 : index
    %8 = vector.load %arg4[%c2, %c0_6] : memref<16x128xf32, #tpu.memory_space<vmem>>, vector<1x128xf32>
    %9 = vector.broadcast %6 : vector<1x128xf32> to vector<8x128xf32>
    %10 = arith.addf %3, %9 : vector<8x128xf32>
    %cst_7 = arith.constant 0.000000e+00 : f32
    %11 = vector.broadcast %cst_7 : f32 to vector<8x128xf32>
    %12 = arith.cmpf ogt, %10, %11 : vector<8x128xf32>
    %cst_8 = arith.constant 0.00999999977 : f32
    %13 = vector.broadcast %cst_8 : f32 to vector<8x128xf32>
    %14 = arith.mulf %13, %10 : vector<8x128xf32>
    %15 = arith.select %12, %10, %14 : vector<8x128xi1>, vector<8x128xf32>
    %c0_9 = arith.constant 0 : index
    %c0_10 = arith.constant 0 : index
    %c0_11 = arith.constant 0 : index
    %16 = vector.load %arg3[%c0_9, %c0_10, %c0_11] : memref<3x128x128xf32, #tpu.memory_space<vmem>>, vector<1x128x128xf32>
    %17 = vector.shape_cast %16 : vector<1x128x128xf32> to vector<128x128xf32>
    %cst_12 = arith.constant dense<0.000000e+00> : vector<8x128xf32>
    %18 = tpu.matmul %15, %17, %cst_12 {dimension_numbers = #tpu.dot_dimension_numbers<[1], [0], [0], [1], [0, 0, 1, 1], [], []>} : vector<8x128xf32>, vector<128x128xf32>, vector<8x128xf32> -> vector<8x128xf32>
    %19 = arith.addf %18, %4 : vector<8x128xf32>
    %20 = vector.broadcast %7 : vector<1x128xf32> to vector<8x128xf32>
    %21 = arith.addf %19, %20 : vector<8x128xf32>
    %cst_13 = arith.constant 0.000000e+00 : f32
    %22 = vector.broadcast %cst_13 : f32 to vector<8x128xf32>
    %23 = arith.cmpf ogt, %21, %22 : vector<8x128xf32>
    %cst_14 = arith.constant 0.00999999977 : f32
    %24 = vector.broadcast %cst_14 : f32 to vector<8x128xf32>
    %25 = arith.mulf %24, %21 : vector<8x128xf32>
    %26 = arith.select %23, %21, %25 : vector<8x128xi1>, vector<8x128xf32>
    %c64_i32 = arith.constant 64 : i32
    %27 = tpu.dynamic_rotate %15 by %c64_i32 dim 1 : vector<8x128xf32>, i32 -> vector<8x128xf32>
    %28 = arith.addf %26, %27 : vector<8x128xf32>
    %c1_15 = arith.constant 1 : index
    %c0_16 = arith.constant 0 : index
    %c0_17 = arith.constant 0 : index
    %29 = vector.load %arg3[%c1_15, %c0_16, %c0_17] : memref<3x128x128xf32, #tpu.memory_space<vmem>>, vector<1x128x128xf32>
    %30 = vector.shape_cast %29 : vector<1x128x128xf32> to vector<128x128xf32>
    %cst_18 = arith.constant dense<0.000000e+00> : vector<8x128xf32>
    %31 = tpu.matmul %28, %30, %cst_18 {dimension_numbers = #tpu.dot_dimension_numbers<[1], [0], [0], [1], [0, 0, 1, 1], [], []>} : vector<8x128xf32>, vector<128x128xf32>, vector<8x128xf32> -> vector<8x128xf32>
    %32 = arith.addf %31, %5 : vector<8x128xf32>
    %33 = vector.broadcast %8 : vector<1x128xf32> to vector<8x128xf32>
    %34 = arith.addf %32, %33 : vector<8x128xf32>
    %c3 = arith.constant 3 : index
    %c0_19 = arith.constant 0 : index
    %35 = vector.load %arg4[%c3, %c0_19] : memref<16x128xf32, #tpu.memory_space<vmem>>, vector<1x128xf32>
    %c4 = arith.constant 4 : index
    %c0_20 = arith.constant 0 : index
    %36 = vector.load %arg4[%c4, %c0_20] : memref<16x128xf32, #tpu.memory_space<vmem>>, vector<1x128xf32>
    %cst_21 = arith.constant 0.000000e+00 : f32
    %37 = vector.broadcast %cst_21 : f32 to vector<8x128xf32>
    %c5 = arith.constant 5 : index
    %c0_22 = arith.constant 0 : index
    %38 = vector.load %arg4[%c5, %c0_22] : memref<16x128xf32, #tpu.memory_space<vmem>>, vector<1x128xf32>
    %c8 = arith.constant 8 : index
    %c0_23 = arith.constant 0 : index
    %39 = vector.load %arg4[%c8, %c0_23] : memref<16x128xf32, #tpu.memory_space<vmem>>, vector<1x128xf32>
    %40 = vector.broadcast %39 : vector<1x128xf32> to vector<8x128xf32>
    %41 = arith.addf %34, %40 : vector<8x128xf32>
    %cst_24 = arith.constant dense<0xFF800000> : vector<8xf32>
    %42 = vector.multi_reduction <maximumf>, %41, %cst_24 [1] : vector<8x128xf32> to vector<8xf32>
    %43 = vector.shape_cast %42 : vector<8xf32> to vector<8x1xf32>
    %44 = vector.broadcast %38 : vector<1x128xf32> to vector<8x128xf32>
    %45 = vector.broadcast %43 : vector<8x1xf32> to vector<8x128xf32>
    %46 = arith.mulf %44, %45 : vector<8x128xf32>
    %47 = arith.addf %37, %46 : vector<8x128xf32>
    %c6 = arith.constant 6 : index
    %c0_25 = arith.constant 0 : index
    %48 = vector.load %arg4[%c6, %c0_25] : memref<16x128xf32, #tpu.memory_space<vmem>>, vector<1x128xf32>
    %c9 = arith.constant 9 : index
    %c0_26 = arith.constant 0 : index
    %49 = vector.load %arg4[%c9, %c0_26] : memref<16x128xf32, #tpu.memory_space<vmem>>, vector<1x128xf32>
    %50 = vector.broadcast %49 : vector<1x128xf32> to vector<8x128xf32>
    %51 = arith.addf %34, %50 : vector<8x128xf32>
    %cst_27 = arith.constant dense<0xFF800000> : vector<8xf32>
    %52 = vector.multi_reduction <maximumf>, %51, %cst_27 [1] : vector<8x128xf32> to vector<8xf32>
    %53 = vector.shape_cast %52 : vector<8xf32> to vector<8x1xf32>
    %54 = vector.broadcast %48 : vector<1x128xf32> to vector<8x128xf32>
    %55 = vector.broadcast %53 : vector<8x1xf32> to vector<8x128xf32>
    %56 = arith.mulf %54, %55 : vector<8x128xf32>
    %57 = arith.addf %47, %56 : vector<8x128xf32>
    %c7 = arith.constant 7 : index
    %c0_28 = arith.constant 0 : index
    %58 = vector.load %arg4[%c7, %c0_28] : memref<16x128xf32, #tpu.memory_space<vmem>>, vector<1x128xf32>
    %c10 = arith.constant 10 : index
    %c0_29 = arith.constant 0 : index
    %59 = vector.load %arg4[%c10, %c0_29] : memref<16x128xf32, #tpu.memory_space<vmem>>, vector<1x128xf32>
    %60 = vector.broadcast %59 : vector<1x128xf32> to vector<8x128xf32>
    %61 = arith.addf %34, %60 : vector<8x128xf32>
    %cst_30 = arith.constant dense<0xFF800000> : vector<8xf32>
    %62 = vector.multi_reduction <maximumf>, %61, %cst_30 [1] : vector<8x128xf32> to vector<8xf32>
    %63 = vector.shape_cast %62 : vector<8xf32> to vector<8x1xf32>
    %64 = vector.broadcast %58 : vector<1x128xf32> to vector<8x128xf32>
    %65 = vector.broadcast %63 : vector<8x1xf32> to vector<8x128xf32>
    %66 = arith.mulf %64, %65 : vector<8x128xf32>
    %67 = arith.addf %57, %66 : vector<8x128xf32>
    %68 = arith.subf %34, %67 : vector<8x128xf32>
    %69 = vector.broadcast %36 : vector<1x128xf32> to vector<8x128xf32>
    %70 = arith.mulf %68, %69 : vector<8x128xf32>
    %71 = math.exp %70 : vector<8x128xf32>
    %72 = vector.broadcast %36 : vector<1x128xf32> to vector<8x128xf32>
    %73 = arith.mulf %71, %72 : vector<8x128xf32>
    %c2_31 = arith.constant 2 : index
    %c0_32 = arith.constant 0 : index
    %c0_33 = arith.constant 0 : index
    %74 = vector.load %arg3[%c2_31, %c0_32, %c0_33] : memref<3x128x128xf32, #tpu.memory_space<vmem>>, vector<1x128x128xf32>
    %75 = vector.shape_cast %74 : vector<1x128x128xf32> to vector<128x128xf32>
    %cst_34 = arith.constant dense<0.000000e+00> : vector<8x128xf32>
    %76 = tpu.matmul %73, %75, %cst_34 {dimension_numbers = #tpu.dot_dimension_numbers<[1], [0], [0], [1], [0, 0, 1, 1], [], []>} : vector<8x128xf32>, vector<128x128xf32>, vector<8x128xf32> -> vector<8x128xf32>
    %cst_35 = arith.constant 1.000000e+00 : f32
    %77 = vector.broadcast %cst_35 : f32 to vector<1x128xf32>
    %78 = arith.subf %77, %36 : vector<1x128xf32>
    %79 = vector.broadcast %78 : vector<1x128xf32> to vector<8x128xf32>
    %80 = arith.addf %76, %79 : vector<8x128xf32>
    %81 = tpu.reciprocal %80 : vector<8x128xf32> -> vector<8x128xf32>
    %82 = arith.mulf %73, %81 : vector<8x128xf32>
    %83 = math.tanh %34 : vector<8x128xf32>
    %84 = vector.broadcast %35 : vector<1x128xf32> to vector<8x128xf32>
    %85 = arith.mulf %84, %83 : vector<8x128xf32>
    %86 = arith.addf %85, %82 : vector<8x128xf32>
    %c0_36 = arith.constant 0 : index
    %c0_37 = arith.constant 0 : index
    %87 = vector.load %arg5[%c0_36, %c0_37] : memref<8x128xf32, #tpu.memory_space<vmem>>, vector<8x128xf32>
    tpu.vector_store %arg5[%c0_36, %c0_37], %86 {strides = array<i32>} : memref<8x128xf32, #tpu.memory_space<vmem>>, vector<8x128xf32>,
    return
  }
  func.func @transform_0(%arg0: i32) -> (i32, i32) {
    %c0_i32 = arith.constant 0 : i32
    %c0_i32_0 = arith.constant 0 : i32
    return %arg0, %c0_i32 : i32, i32
  }
  func.func @transform_1(%arg0: i32) -> (i32, i32) {
    %c0_i32 = arith.constant 0 : i32
    %c0_i32_0 = arith.constant 0 : i32
    %c0_i32_1 = arith.constant 0 : i32
    return %c0_i32, %c0_i32_0 : i32, i32
  }
  func.func @transform_2(%arg0: i32) -> (i32, i32, i32) {
    %c0_i32 = arith.constant 0 : i32
    %c0_i32_0 = arith.constant 0 : i32
    %c0_i32_1 = arith.constant 0 : i32
    %c0_i32_2 = arith.constant 0 : i32
    return %c0_i32, %c0_i32_0, %c0_i32_1 : i32, i32, i32
  }
  func.func @transform_3(%arg0: i32) -> (i32, i32) {
    %c0_i32 = arith.constant 0 : i32
    %c0_i32_0 = arith.constant 0 : i32
    %c0_i32_1 = arith.constant 0 : i32
    return %c0_i32, %c0_i32_0 : i32, i32
  }
  func.func @transform_4(%arg0: i32) -> (i32, i32) {
    %c0_i32 = arith.constant 0 : i32
    %c0_i32_0 = arith.constant 0 : i32
    return %arg0, %c0_i32 : i32, i32
  }
}

</mosaic_0001>

<bundles_post_ra>
// kernel: tpu_custom_call.1
= control target key start
LH: loop header
LB: loop body
LE: loop exit
PB: predicated region body
PF: predicated region fallthrough
CT: control target
= control target key end

     0   :  { %9 = vsyncpa [#allocation3], 0  ;;  %s1140_s0 = inlined_call_operand.hbm [shape: f32[8,24], index: 0, kind: input, shape index: {}]   ;;  %s1141_s1 = inlined_call_operand.hbm [shape: f32[24,384], index: 1, kind: input, shape index: {}]   ;;  %s1142_s2 = inlined_call_operand.hbm [shape: f32[3,128,128], index: 2, kind: input, shape index: {}]   ;;  %s1143_s3 = inlined_call_operand.hbm [shape: f32[16,128], index: 3, kind: input, shape index: {}]   ;;  %s1144_s4 = inlined_call_operand.hbm [shape: f32[8,128], index: 4, kind: output, shape index: {}]  }
   0x1   :  { %10 = vsyncpa [#allocation6], 0 }
   0x2   :  { %11 = vsyncpa [#allocation9], 0 }
   0x3   :  { %12 = vsyncpa [#allocation4], 0  ;;  %s998_s15 = smov [#allocation5]   ;;  %s880_s19 = scalar_lea.hbm %s1141_s1, 1152 }
   0x4   :  { %s28_s16 = sshll.u32 %s998_s15, 4  ;;  %p881_p0 = scmp.ne.s32.totalorder %s1141_s1, %s880_s19  ;;  %s29_s16 = int_to_ptr.vmem [resolvable:$true] %s28_s16 }
   0x5   :  { %p884_p1 = scmp.lt.u32.totalorder %s880_s19, %s1141_s1 }
   0x7   :  { %p886_p2 = pnand %p884_p1, %p881_p0 }
   0x9   :  { %889 = shalt.err (!%p886_p2)
}
   0xa   :  { %s890_s24 = scalar_lea.vmem %s29_s16, 1152  ;;  %p895_p4 = scmp.lt.s32.totalorder %s29_s16, %s29_s16 }
   0xb   :  { %p891_p3 = scmp.ne.s32.totalorder %s29_s16, %s890_s24  ;;  %p896_p5 = scmp.lt.s32.totalorder %s890_s24, %s890_s24 }
   0xd   :  { %p897_p6 = por %p896_p5, %p895_p4 }
   0xf   :  { %p898_p7 = pnand %p897_p6, %p891_p3 }
  0x11   :  { %901 = shalt.err (!%p898_p7)
}
  0x12   :  { %s999_s25 = smov 384   ;;  %s1000_s26 = smov 24  }
  0x13   :  { %34 = dma.hbm_to_vmem [thread:$0]  %s1141_s1, 1152, %s29_s16, [#allocation6], %s999_s25, %s999_s25, %s1000_s26  }
  0x14   :  { %s1001_s29 = smov [#allocation2]   ;;  %s1002_s5 = smov [#allocation7]  }
  0x15   :  { %s19_s30 = sshll.u32 %s1001_s29, 4  ;;  %s40_s6 = sshll.u32 %s1002_s5, 4  ;;  %s20_s30 = int_to_ptr.vmem [resolvable:$true] %s19_s30  ;;  %s41_s6 = int_to_ptr.vmem [resolvable:$true] %s40_s6 }
  0x16   :  { %s902_s9 = scalar_lea.hbm %s1140_s0, 128 }
  0x17   :  { %p903_p8 = scmp.ne.s32.totalorder %s1140_s0, %s902_s9  ;;  %p906_p9 = scmp.lt.u32.totalorder %s902_s9, %s1140_s0 }
  0x19   :  { %p908_p10 = pnand %p906_p9, %p903_p8 }
  0x1b   :  { %911 = shalt.err (!%p908_p10)
}
  0x1c   :  { %s912_s1 = scalar_lea.vmem %s20_s30, 128  ;;  %p917_p12 = scmp.lt.s32.totalorder %s20_s30, %s20_s30 }
  0x1d   :  { %p913_p11 = scmp.ne.s32.totalorder %s20_s30, %s912_s1  ;;  %p918_p13 = scmp.lt.s32.totalorder %s912_s1, %s912_s1 }
  0x1f   :  { %p919_p0 = por %p918_p13, %p917_p12 }
  0x21   :  { %p920_p1 = pnand %p919_p0, %p913_p11 }
  0x23   :  { %923 = shalt.err (!%p920_p1)
}
  0x24   :  { %22 = dma.hbm_to_vmem [thread:$0]  %s1140_s0, 128, %s20_s30, [#allocation3]  }
  0x25   :  { %s924_s18 = scalar_lea.hbm %s1142_s2, 6144 }
  0x26   :  { %p925_p2 = scmp.ne.s32.totalorder %s1142_s2, %s924_s18  ;;  %p928_p3 = scmp.lt.u32.totalorder %s924_s18, %s1142_s2 }
  0x28   :  { %p930_p4 = pnand %p928_p3, %p925_p2 }
  0x2a   :  { %933 = shalt.err (!%p930_p4)
}
  0x2b   :  { %s934_s23 = scalar_lea.vmem %s41_s6, 6144  ;;  %p939_p6 = scmp.lt.s32.totalorder %s41_s6, %s41_s6 }
  0x2c   :  { %p935_p5 = scmp.ne.s32.totalorder %s41_s6, %s934_s23  ;;  %p940_p7 = scmp.lt.s32.totalorder %s934_s23, %s934_s23 }
  0x2e   :  { %p941_p8 = por %p940_p7, %p939_p6 }
  0x30   :  { %p942_p9 = pnand %p941_p8, %p935_p5 }
  0x32   :  { %945 = shalt.err (!%p942_p9)
}
  0x33   :  { %s1003_s0 = smov 128   ;;  %s1004_s24 = smov 8  }
  0x34   :  { %46 = dma.hbm_to_vmem [thread:$0]  %s1142_s2, 6144, %s41_s6, [#allocation6], %s1003_s0, %s1003_s0, %s1004_s24  }
  0x35   :  { %s1005_s27 = smov [#allocation8]   ;;  %s946_s5 = scalar_lea.hbm %s1143_s3, 256 }
  0x36   :  { %s52_s28 = sshll.u32 %s1005_s27, 4  ;;  %p947_p10 = scmp.ne.s32.totalorder %s1143_s3, %s946_s5  ;;  %s53_s28 = int_to_ptr.vmem [resolvable:$true] %s52_s28 }
  0x37   :  { %p950_p11 = scmp.lt.u32.totalorder %s946_s5, %s1143_s3 }
  0x39   :  { %p952_p12 = pnand %p950_p11, %p947_p10 }
  0x3b   :  { %955 = shalt.err (!%p952_p12)
}
  0x3c   :  { %s956_s11 = scalar_lea.vmem %s53_s28, 256  ;;  %p961_p0 = scmp.lt.s32.totalorder %s53_s28, %s53_s28 }
  0x3d   :  { %p957_p13 = scmp.ne.s32.totalorder %s53_s28, %s956_s11  ;;  %p962_p1 = scmp.lt.s32.totalorder %s956_s11, %s956_s11 }
  0x3f   :  { %p963_p2 = por %p962_p1, %p961_p0 }
  0x41   :  { %p964_p3 = pnand %p963_p2, %p957_p13 }
  0x43   :  { %967 = shalt.err (!%p964_p3)
}
  0x44   :  { %58 = dma.hbm_to_vmem [thread:$0]  %s1143_s3, 256, %s53_s28, [#allocation9], %s1003_s0, %s1003_s0, %s1004_s24  }
  0x45   :  { %990 = dma.done.wait [#allocation3], 128  }
  0x46   :  { %991 = vsyncadd [#allocation3], 4294967168 }
  0x47   :  { %992 = dma.done.wait [#allocation6], 7296  }
  0x48   :  { %993 = vsyncadd [#allocation6], 4294960000 }
  0x49   :  { %994 = dma.done.wait [#allocation9], 256  }
  0x4a   :  { %995 = vsyncadd [#allocation9], 4294967040  ;;  %v1006_v0 = vmov 0.0   ;;  %v1007_v1 = vmov 0.0|0.0   ;;  %v73_v2 = vld [vmem:[#allocation5 + $0x8] sm:$0xff]  ;;  %v76_v3 = vld [vmem:[#allocation5 + $0x20] sm:$0xff] }
  0x4b   :  { %149 = vmatprep.mubr.f32.mxu1 %v1006_v0  ;;  %789 = vmatprep.subr.bf16.mxu0 %v1007_v1  ;;  %v72_v4 = vld [vmem:[#allocation5] sm:$0xff]  ;;  %v782_v5 = vpack.c.bf16 %v76_v3, %v73_v2  ;;  %v75_v6 = vld [vmem:[#allocation5 + $0x18] sm:$0xff]  ;;  %v237_v9 = vld [vmem:[#allocation7] sm:$0xff]  ;;  %vm81_vm0 = vcmask 195584   ;;  %vm1008_vm1 = vmmov 0   ;;  %s1009_s3 = smov 64  }
  0x4c   :  { %v784_v7 = vpack.c.bf16 %v75_v6, %v72_v4  ;;  %v79_v8 = vld [vmem:[#allocation5 + $0x38] sm:$0xff]  ;;  %v238_v10 = vld [vmem:[#allocation7 + $0x8] sm:$0xff]  ;;  %v240_v13 = vld [vmem:[#allocation7 + $0x18] sm:$0xff]  ;;  %709 = vmatprep.mubr.msk.f32.mxu0 %vm1008_vm1, %v1006_v0  ;;  %s1010_s12 = smov [#allocation10]  }
  0x4d   :  { %783 = vmatprep.subr.bf16.mxu1 %v782_v5  ;;  %v790_v11 = vpack.c.bf16 %v238_v10, %v237_v9  ;;  %v239_v12 = vld [vmem:[#allocation7 + $0x10] sm:$0xff]  ;;  %v78_v14 = vld [vmem:[#allocation5 + $0x30] sm:$0xff]  ;;  %v241_v17 = vld [vmem:[#allocation7 + $0x20] sm:$0xff]  ;;  %s590_s13 = sshll.u32 %s1010_s12, 4  ;;  %s591_s13 = int_to_ptr.vmem [resolvable:$true] %s590_s13 }
  0x4e   :  { %785 = vmatpush1.bf16.msra.mxu1 %v784_v7  ;;  %v793_v15 = vpack.c.bf16 %v240_v13, %v239_v12  ;;  %v71_v16 = vld [vmem:[#allocation2] sm:$0xff]  ;;  %v242_v18 = vld [vmem:[#allocation7 + $0x28] sm:$0xff]  ;;  %v244_v21 = vld [vmem:[#allocation7 + $0x38] sm:$0xff]  ;;  %s968_s1 = scalar_lea.vmem %s591_s13, 128  ;;  %p973_p5 = scmp.lt.s32.totalorder %s591_s13, %s591_s13 }
  0x4f   :  { %89 = vmatprep.subr.mxu1 %v79_v8  ;;  %791 = vmatpush3.bf16.msra.mxu0 %v790_v11  ;;  %v796_v19 = vpack.c.bf16 %v242_v18, %v241_v17  ;;  %v243_v20 = vld [vmem:[#allocation7 + $0x30] sm:$0xff]  ;;  %v245_v23 = vld [vmem:[#allocation7 + $0x40] sm:$0xff]  ;;  %v246_v24 = vld [vmem:[#allocation7 + $0x48] sm:$0xff]  ;;  %p969_p4 = scmp.ne.s32.totalorder %s591_s13, %s968_s1  ;;  %p974_p6 = scmp.lt.s32.totalorder %s968_s1, %s968_s1 }
  0x50   :  { %792 = vmatprep.subr.bf16.mxu0 %v1007_v1  ;;  %v799_v22 = vpack.c.bf16 %v244_v21, %v243_v20  ;;  %v802_v25 = vpack.c.bf16 %v246_v24, %v245_v23  ;;  %v247_v26 = vld [vmem:[#allocation7 + $0x50] sm:$0xff]  ;;  %v248_v27 = vld [vmem:[#allocation7 + $0x58] sm:$0xff]  ;;  %v249_v29 = vld [vmem:[#allocation7 + $0x60] sm:$0xff] }
  0x51   :  { %v805_v28 = vpack.c.bf16 %v248_v27, %v247_v26  ;;  %v250_v30 = vld [vmem:[#allocation7 + $0x68] sm:$0xff]  ;;  %v251_v32 = vld [vmem:[#allocation7 + $0x70] sm:$0xff]  ;;  %v252_v33 = vld [vmem:[#allocation7 + $0x78] sm:$0xff]  ;;  %p975_p7 = por %p974_p6, %p973_p5 }
  0x52   :  { %90 = vmatpush1.msra.mxu1 %v78_v14  ;;  %v808_v31 = vpack.c.bf16 %v250_v30, %v249_v29  ;;  %v811_v34 = vpack.c.bf16 %v252_v33, %v251_v32  ;;  %v74_v35 = vld [vmem:[#allocation5 + $0x10] sm:$0xff]  ;;  %v77_v36 = vld [vmem:[#allocation5 + $0x28] sm:$0xff]  ;;  %v80_v40 = vld [vmem:[#allocation5 + $0x40] sm:$0xff] }
  0x53   :  { %601 = vmatmul.mubr.msk.f32.vlgmr.msra.gmra.mrb[0].mxu1 %vm81_vm0, %v71_v16  ;;  %794 = vmatpush3.bf16.msra.mxu0 %v793_v15  ;;  %v787_v37 = vpack.c.bf16 %v77_v36, %v74_v35  ;;  %v335_v38 = vld [vmem:[#allocation7 + $0x80] sm:$0xff]  ;;  %v336_v39 = vld [vmem:[#allocation7 + $0x88] sm:$0xff]  ;;  %v337_v43 = vld [vmem:[#allocation7 + $0x90] sm:$0xff]  ;;  %p976_p8 = pnand %p975_p7, %p969_p4 }
  0x54   :  { %795 = vmatprep.subr.bf16.mxu0 %v1007_v1  ;;  %786 = vmatprep.subr.bf16.mxu1 %v1007_v1  ;;  %v814_v41 = vpack.c.bf16 %v336_v39, %v335_v38  ;;  %v603_v42 = vld [vmem:[#allocation8] ss:$0 sm:$0xff]  ;;  %v338_v44 = vld [vmem:[#allocation7 + $0x98] sm:$0xff]  ;;  %v340_v50 = vld [vmem:[#allocation7 + $0xa8] sm:$0xff] }
  0x55   :  { %674 = vmatprep.mubr.msk.f32.mxu1 %vm1008_vm1, %v1006_v0  ;;  %788 = vmatpush3.bf16.msra.mxu1 %v787_v37  ;;  %v817_v48 = vpack.c.bf16 %v338_v44, %v337_v43  ;;  %v339_v49 = vld [vmem:[#allocation7 + $0xa0] sm:$0xff]  ;;  %v341_v54 = vld [vmem:[#allocation7 + $0xb0] sm:$0xff]  ;;  %v342_v55 = vld [vmem:[#allocation7 + $0xb8] sm:$0xff] }
  0x56   :  { %672 = vmatprep.subr.mxu1 %v1006_v0  ;;  %v820_v53 = vpack.c.bf16 %v340_v50, %v339_v49  ;;  %v823_v56 = vpack.c.bf16 %v342_v55, %v341_v54  ;;  %v343_v57 = vld [vmem:[#allocation7 + $0xc0] sm:$0xff]  ;;  %v344_v58 = vld [vmem:[#allocation7 + $0xc8] sm:$0xff]  ;;  %v345_v60 = vld [vmem:[#allocation7 + $0xd0] sm:$0xff] }
  0x57   :  { %797 = vmatpush3.bf16.msra.mxu0 %v796_v19  ;;  %v826_v59 = vpack.c.bf16 %v344_v58, %v343_v57  ;;  %v346_v61 = vld [vmem:[#allocation7 + $0xd8] sm:$0xff]  ;;  %v347_v63 = vld [vmem:[#allocation7 + $0xe0] sm:$0xff]  ;;  %v349_v3 = vld [vmem:[#allocation7 + $0xf0] sm:$0xff] }
  0x58   :  { %798 = vmatprep.subr.bf16.mxu0 %v1007_v1  ;;  %v829_v62 = vpack.c.bf16 %v346_v61, %v345_v60  ;;  %v350_v4 = vld [vmem:[#allocation7 + $0xf8] sm:$0xff]  ;;  %v604_v8 = vld [vmem:[#allocation8 + $0x1] ss:$0 sm:$0xff]  ;;  %v484_v18 = vld [vmem:[#allocation7 + $0x108] sm:$0xff] }
  0x59   :  { %673 = vmatpush3.msra.mxu1 %v80_v40  ;;  %v835_v5 = vpack.c.bf16 %v350_v4, %v349_v3  ;;  %v483_v17 = vld [vmem:[#allocation7 + $0x100] sm:$0xff]  ;;  %v608_v24 = vld [vmem:[#allocation8 + $0x9] ss:$0 sm:$0xff]  ;;  %v610_v29 = vld [vmem:[#allocation8 + $0xa] ss:$0 sm:$0xff] }
  0x5a   :  { %675 = vmatmul.mubr.msk.f32.vlgmr.msra.gmra.mrb[2].mxu1 %vm81_vm0, %v71_v16  ;;  %813 = vmatprep.subr.bf16.mxu1 %v1007_v1  ;;  %v838_v19 = vpack.c.bf16 %v484_v18, %v483_v17  ;;  %v605_v20 = vld [vmem:[#allocation8 + $0x2] ss:$0 sm:$0xff]  ;;  %v486_v32 = vld [vmem:[#allocation7 + $0x118] sm:$0xff]  ;;  %v488_v35 = vld [vmem:[#allocation7 + $0x128] sm:$0xff] }
  0x5b   :  { %800 = vmatpush3.bf16.msra.mxu0 %v799_v22  ;;  %815 = vmatpush3.bf16.msra.mxu1 %v814_v41  ;;  %v489_v37 = vld [vmem:[#allocation7 + $0x130] sm:$0xff]  ;;  %v490_v38 = vld [vmem:[#allocation7 + $0x138] sm:$0xff]  ;;  %v491_v40 = vld [vmem:[#allocation7 + $0x140] sm:$0xff] }
  0x5c   :  { %801 = vmatprep.subr.bf16.mxu0 %v1007_v1  ;;  %744 = vmatprep.mubr.msk.f32.mxu1 %vm1008_vm1, %v1006_v0  ;;  %v847_v39 = vpack.c.bf16 %v490_v38, %v489_v37  ;;  %v492_v41 = vld [vmem:[#allocation7 + $0x148] sm:$0xff]  ;;  %v493_v43 = vld [vmem:[#allocation7 + $0x150] sm:$0xff]  ;;  %v494_v44 = vld [vmem:[#allocation7 + $0x158] sm:$0xff] }
  0x5d   :  { %816 = vmatprep.subr.bf16.mxu1 %v1007_v1  ;;  %v497_v49 = vld [vmem:[#allocation7 + $0x170] sm:$0xff]  ;;  %v498_v50 = vld [vmem:[#allocation7 + $0x178] sm:$0xff]  ;;  %v427_v54 = vld [vmem:[#allocation8 + $0x4] sm:$0x1] }
  0x5e   :  { %v609_v58 = vld [vmem:[#allocation8 + $0x6] ss:$0 sm:$0xff] }
  0x5f   :  { %803 = vmatpush3.bf16.msra.mxu0 %v802_v25  ;;  %818 = vmatpush3.bf16.msra.mxu1 %v817_v48  ;;  %v606_v25 = vld [vmem:[#allocation8 + $0x8] ss:$0 sm:$0xff] }
  0x60   :  { %804 = vmatprep.subr.bf16.mxu0 %v1007_v1  ;;  %819 = vmatprep.subr.bf16.mxu1 %v1007_v1 }
  0x63   :  { %806 = vmatpush3.bf16.msra.mxu0 %v805_v28  ;;  %821 = vmatpush3.bf16.msra.mxu1 %v820_v53 }
  0x64   :  { %807 = vmatprep.subr.bf16.mxu0 %v1007_v1  ;;  %822 = vmatprep.subr.bf16.mxu1 %v1007_v1 }
  0x67   :  { %809 = vmatpush3.bf16.msra.mxu0 %v808_v31  ;;  %824 = vmatpush3.bf16.msra.mxu1 %v823_v56  ;;  %v485_v31 = vld [vmem:[#allocation7 + $0x110] sm:$0xff]  ;;  %v499_v56 = vsub.f32 1.0, %v427_v54 }
  0x68   :  { %810 = vmatprep.subr.bf16.mxu0 %v1007_v1  ;;  %825 = vmatprep.subr.bf16.mxu1 %v1007_v1  ;;  %v841_v33 = vpack.c.bf16 %v486_v32, %v485_v31 }
  0x6b   :  { %812 = vmatpush3.bf16.msra.mxu0 %v811_v34  ;;  %827 = vmatpush3.bf16.msra.mxu1 %v826_v59  ;;  %v487_v34 = vld [vmem:[#allocation7 + $0x120] sm:$0xff] }
  0x6c   :  { %837 = vmatprep.subr.bf16.mxu0 %v1007_v1  ;;  %828 = vmatprep.subr.bf16.mxu1 %v1007_v1  ;;  %v844_v36 = vpack.c.bf16 %v488_v35, %v487_v34  ;;  %v607_v59 = vld [vmem:[#allocation8 + $0x5] ss:$0 sm:$0xff] }
  0x6f   :  { %830 = vmatpush3.bf16.msra.mxu1 %v829_v62 }
  0x70   :  { %831 = vmatprep.subr.bf16.mxu1 %v1007_v1 }
 0x126   :  { %v151_v45 = vpop.f32.mrb[0].mxu1 }
 0x127   :  { %v233_v46 = vadd.f32 %v603_v42, %v151_v45  ;;  %v153_v47 = vpop.f32.mrb[1].mxu1  ;;  %v850_v42 = vpack.c.bf16 %v492_v41, %v491_v40  ;;  %v853_v45 = vpack.c.bf16 %v494_v44, %v493_v43 }
 0x129   :  { %vm234_vm2 = vcmp.gt.f32.partialorder %v233_v46, 0.0  ;;  %v235_v51 = vmul.f32 0.01, %v233_v46 }
 0x12b   :  { %v236_v52 = vsel %vm234_vm2, %v233_v46, %v235_v51  ;;  %v495_v46 = vld [vmem:[#allocation7 + $0x160] sm:$0xff]  ;;  %v474_v51 = vlaneseq }
 0x12c   :  { %331 = vrot.lane.b32.xlu0 %v236_v52, %s1009_s3  ;;  %710 = vmatmul.mubr.f32.vlgmr.msra.gmra.mrb[0].mxu0 %v236_v52  ;;  %v859_v52 = vpack.c.bf16 %v498_v50, %v497_v49 }
 0x12d   :  { %779 = vmatprep.mubr.msk.f32.mxu0 %vm1008_vm1, %v1006_v0  ;;  %v348_v0 = vld [vmem:[#allocation7 + $0xe8] sm:$0xff]  ;;  %v222_v6 = vpop.f32.mrb[2].mxu1  ;;  %839 = vmatpush3.bf16.msra.mxu0 %v838_v19  ;;  %v475_v53 = vshrl.u32 %v474_v51, 7 }
 0x12e   :  { %v832_v2 = vpack.c.bf16 %v348_v0, %v347_v63  ;;  %v676_v7 = vpop.f32.mrb[3].mxu1  ;;  %840 = vmatprep.subr.bf16.mxu0 %v1007_v1  ;;  %v611_v0 = vld [vmem:[#allocation8 + $0x7] ss:$0 sm:$0xff] }
 0x12f   :  { %v476_v55 = vsub.s32 0, %v475_v53 }
 0x130   :  { %833 = vmatpush3.bf16.msra.mxu1 %v832_v2 }
 0x131   :  { %834 = vmatprep.subr.bf16.mxu1 %v1007_v1  ;;  %842 = vmatpush3.bf16.msra.mxu0 %v841_v33  ;;  %v503_v57 = vrot.slane %v499_v56, %v476_v55 }
 0x132   :  { %843 = vmatprep.subr.bf16.mxu0 %v1007_v1 }
 0x134   :  { %836 = vmatpush3.bf16.msra.mxu1 %v835_v5  ;;  %v477_v5 = vrot.slane %v427_v54, %v476_v55 }
 0x135   :  { %845 = vmatpush3.bf16.msra.mxu0 %v844_v36 }
 0x136   :  { %846 = vmatprep.subr.bf16.mxu0 %v1007_v1 }
 0x139   :  { %848 = vmatpush3.bf16.msra.mxu0 %v847_v39 }
 0x13a   :  { %849 = vmatprep.subr.bf16.mxu0 %v1007_v1 }
 0x13d   :  { %851 = vmatpush3.bf16.msra.mxu0 %v850_v42 }
 0x13e   :  { %852 = vmatprep.subr.bf16.mxu0 %v1007_v1 }
 0x141   :  { %854 = vmatpush3.bf16.msra.mxu0 %v853_v45 }
 0x142   :  { %855 = vmatprep.subr.bf16.mxu0 %v1007_v1 }
 0x19e   :  { %v332_v14 = vpop.permute.xlu0 %331 }
 0x1ff   :  { %v319_v9 = vpop.f32.mrb[0].mxu0 }
 0x200   :  { %v320_v10 = vadd.f32 %v319_v9, %v153_v47  ;;  %v711_v11 = vpop.f32.mrb[1].mxu0  ;;  %v496_v47 = vld [vmem:[#allocation7 + $0x168] sm:$0xff] }
 0x201   :  { %v856_v48 = vpack.c.bf16 %v496_v47, %v495_v46 }
 0x202   :  { %v327_v12 = vadd.f32 %v604_v8, %v320_v10 }
 0x203   :  { %857 = vmatpush3.bf16.msra.mxu0 %v856_v48 }
 0x204   :  { %vm328_vm3 = vcmp.gt.f32.partialorder %v327_v12, 0.0  ;;  %v329_v13 = vmul.f32 0.01, %v327_v12  ;;  %858 = vmatprep.subr.bf16.mxu0 %v1007_v1 }
 0x206   :  { %v330_v15 = vsel %vm328_vm3, %v327_v12, %v329_v13 }
 0x207   :  { %v333_v16 = vadd.f32 %v332_v14, %v330_v15  ;;  %860 = vmatpush3.bf16.msra.mxu0 %v859_v52  ;;  %v612_v15 = vld [vmem:[#allocation8 + $0x3] ss:$0 sm:$0xff] }
 0x209   :  { %745 = vmatmul.mubr.f32.vlgmr.msra.gmra.mrb[4].mxu1 %v333_v16 }
 0x2dc   :  { %v417_v21 = vpop.f32.mrb[4].mxu1 }
 0x2dd   :  { %v418_v22 = vadd.f32 %v417_v21, %v222_v6  ;;  %v746_v23 = vpop.f32.mrb[5].mxu1 }
 0x2df   :  { %v1115_v26 = vadd.f32 %v605_v20, %v418_v22 }
 0x2e1   :  { %v449_v27 = vadd.f32 %v608_v24, %v1115_v26  ;;  %v434_v28 = vadd.f32 %v606_v25, %v1115_v26  ;;  %v464_v30 = vadd.f32 %v610_v29, %v1115_v26 }
 0x2e3   :  { %450 = vmax.xlane.f32.xlu1 %v449_v27  ;;  %435 = vmax.xlane.f32.xlu0 %v434_v28 }
 0x2e7   :  { %465 = vmax.xlane.f32.xlu1 %v464_v30 }
 0x370   :  { %v451_v60 = vpop.xlane.xlu1 %450  ;;  %v436_v61 = vpop.xlane.xlu0 %435 }
 0x371   :  { %v456_v62 = vmul.f32 %v609_v58, %v451_v60  ;;  %v441_v63 = vmul.f32 %v607_v59, %v436_v61 }
 0x373   :  { %v457_v3 = vadd.f32 %v456_v62, %v441_v63 }
 0x374   :  { %v466_v2 = vpop.xlane.xlu1 %465 }
 0x375   :  { %v471_v4 = vmul.f32 %v611_v0, %v466_v2 }
 0x377   :  { %v472_v6 = vadd.f32 %v471_v4, %v457_v3 }
 0x379   :  { %v473_v1 = vsub.f32 %v1115_v26, %v472_v6 }
 0x37b   :  { %v478_v7 = vmul.f32 %v477_v5, %v473_v1 }
 0x37d   :  { %v479_v8 = vmul.f32 1.442695, %v478_v7 }
 0x37f   :  { %874 = vpow2.f32 %v479_v8 }
 0x380   :  { %876 = vtanh.f32 %v1115_v26 }
 0x389   :  { %v875_v9 = vpop.eup %874 }
 0x38a   :  { %v481_v10 = vmul.f32 %v875_v9, %v477_v5  ;;  %v877_v14 = vpop.eup %876 }
 0x38b   :  { %v581_v18 = vmul.f32 %v877_v14, %v612_v15 }
 0x38c   :  { %780 = vmatmul.mubr.f32.vlgmr.msra.gmra.mrb[2].mxu0 %v481_v10 }
 0x45f   :  { %v570_v11 = vpop.f32.mrb[2].mxu0 }
 0x460   :  { %v571_v12 = vadd.f32 %v570_v11, %v503_v57  ;;  %v781_v13 = vpop.f32.mrb[3].mxu0 }
 0x462   :  { %878 = vrcp.f32 %v571_v12 }
 0x46c   :  { %v879_v16 = vpop.eup %878 }
 0x46d   :  { %v575_v17 = vmul.f32 %v879_v16, %v481_v10 }
 0x46f   :  { %v582_v19 = vadd.f32 %v581_v18, %v575_v17 }
 0x471   :  { %583 = vst [vmem:[#allocation10] sm:$0xff] %v582_v19 }
 0x472   :  { %979 = shalt.err (!%p976_p8)
}
 0x473   :  { %s980_s16 = scalar_lea.hbm %s1144_s4, 128 }
 0x474   :  { %p981_p9 = scmp.ne.s32.totalorder %s1144_s4, %s980_s16  ;;  %p984_p10 = scmp.lt.u32.totalorder %s980_s16, %s1144_s4 }
 0x476   :  { %p986_p11 = pnand %p984_p10, %p981_p9 }
 0x478   :  { %989 = shalt.err (!%p986_p11)
}
 0x479   :  { %593 = dma.vmem_to_hbm [thread:$0]  %s591_s13, 128, %s1144_s4, [#allocation4]  }
 0x47a   :  { %996 = dma.done.wait [#allocation4], 128  }
 0x47b   :  { %997 = vsyncadd [#allocation4], 4294967168 }
 0x47c   :  { %597 = vsyncpa [#allocation3], 1 }
 0x47d   :  { %598 = vsyncpa [#allocation6], 1 }
 0x47e   :  { %599 = vsyncpa [#allocation9], 1 }
 0x47f   :  { %600 = vsyncpa [#allocation4], 1 }

</bundles_post_ra>
